<compile_context>
chip_gen: v7x
topology: tpu7x:2x2x1
jax: 0.10.0
libtpu: 0.0.40
codegen_flags: <defaults>
</compile_context>

<pallas_src>
import functools

import numpy as np
import jax
import jax.numpy as jnp
from jax import lax
from jax.experimental import pallas as pl
from jax.experimental.pallas import tpu as pltpu


def _round_up(v: int, m: int) -> int:
    return ((v + m - 1) // m) * m


def _sim_kernel(x_ref, y_ref, xn_ref, yn_ref, o_ref, *, eps_temp: float):
    # x_ref:  (tm, H) left embeddings, native dtype (fast MXU path)
    # y_ref:  (tn, H) right embeddings, native dtype
    # xn_ref: (tm, 1) f32, temp * ||x_m||   (precomputed in the wrapper)
    # yn_ref: (1, tn) f32, ||y_n||          (precomputed in the wrapper)
    # o_ref:  (tm, tn) = cos(x_m, y_n) / temp
    dots = lax.dot_general(
        x_ref[...], y_ref[...],
        dimension_numbers=(((1,), (1,)), ((), ())),   # contract on H, no transpose
        preferred_element_type=jnp.float32)           # (tm, tn) f32 accumulation
    # torch.nn.CosineSimilarity clamps the product of norms with eps; with
    # temp folded in, the clamp becomes eps*temp.
    denom = jnp.maximum(xn_ref[...] * yn_ref[...], eps_temp)     # (tm, tn)
    o_ref[...] = (dots * pl.reciprocal(denom, approx=True)).astype(o_ref.dtype)


def similarity(x, y, temp, *, eps=1e-8, block_m=256, block_n=256, out_dtype=None):
    """Pallas Similarity.forward.

    Accepts x of shape (M, H) or (M, 1, H) and y of shape (N, H) or (1, N, H)
    (the unsqueeze pattern the module is used with) and returns the (M, N)
    matrix  cos(x_m, y_n) / temp.
    """
    # TODO(synk): general torch broadcasting of CosineSimilarity is not
    # implemented; only the pairwise (M,1,H) x (1,N,H) / plain 2-D form is.
    if x.ndim == 3 and x.shape[1] == 1:
        x = jnp.squeeze(x, axis=1)
    if y.ndim == 3 and y.shape[0] == 1:
        y = jnp.squeeze(y, axis=0)
    assert x.ndim == 2 and y.ndim == 2 and x.shape[-1] == y.shape[-1], (x.shape, y.shape)
    assert temp > 0, "folding 1/temp into the clamped denominator assumes temp > 0"

    M, H = x.shape
    N, _ = y.shape
    if out_dtype is None:
        out_dtype = jnp.result_type(x.dtype, y.dtype)

    # Row L2 norms in f32, computed once in the wrapper instead of per output
    # tile.  1/temp is folded into the x-side norms so the kernel epilogue is
    # a single multiply by an approx reciprocal.
    xn = jnp.sqrt(jnp.sum(jnp.square(x.astype(jnp.float32)), axis=-1, keepdims=True))
    yn = jnp.sqrt(jnp.sum(jnp.square(y.astype(jnp.float32)), axis=-1, keepdims=True))
    xn = xn * jnp.float32(temp)             # (M, 1)
    ynT = yn.T                              # (1, N)
    eps_temp = float(eps) * float(temp)

    # Tile selection: lane-dense blocks; full extent for small problems so the
    # common aligned case needs no padding at all.
    block_m = max(8, _round_up(block_m, 8))
    block_n = max(128, _round_up(block_n, 128))
    tm = M if M <= block_m else block_m
    tn = N if N <= block_n else block_n
    # v7x has two TensorCores: make sure typical SimCSE batches (>=256) give at
    # least two blocks along the "parallel" M axis.  On v5e/v6e (single TC) the
    # extra grid step costs ~0.35us and is negligible.
    if M >= 256 and tm >= M:
        tm = _round_up((M + 1) // 2, 8)

    Mp, Np = _round_up(M, tm), _round_up(N, tn)
    if Mp != M:                              # pad only when actually needed
        x = jnp.pad(x, ((0, Mp - M), (0, 0)))
        xn = jnp.pad(xn, ((0, Mp - M), (0, 0)))
    if Np != N:
        y = jnp.pad(y, ((0, Np - N), (0, 0)))
        ynT = jnp.pad(ynT, ((0, 0), (0, Np - N)))
    # Padded rows: zero dots, zero norms -> denom clamps to eps*temp -> output
    # 0 in the region sliced off below.

    grid = (Mp // tm, Np // tn)
    kernel = functools.partial(_sim_kernel, eps_temp=eps_temp)

    # VMEM budget: double-buffered x/y tiles + f32 epilogue + output tile.
    # Clamp so the limit also fits v7x's 64 MiB physical VMEM with headroom.
    tile_bytes = (tm * H * x.dtype.itemsize + tn * H * y.dtype.itemsize
                  + tm * tn * (4 + np.dtype(out_dtype).itemsize)
                  + 4 * (tm + tn))
    vmem_limit = int(min(max(3 * tile_bytes, 32 * 1024 * 1024), 48 * 1024 * 1024))

    out = pl.pallas_call(
        kernel,
        out_shape=jax.ShapeDtypeStruct((Mp, Np), out_dtype),
        grid=grid,
        in_specs=[
            pl.BlockSpec((tm, H), lambda i, j: (i, 0)),   # x rows for block i
            pl.BlockSpec((tn, H), lambda i, j: (j, 0)),   # y rows for block j
            pl.BlockSpec((tm, 1), lambda i, j: (i, 0)),   # temp * ||x||
            pl.BlockSpec((1, tn), lambda i, j: (0, j)),   # ||y||
        ],
        out_specs=pl.BlockSpec((tm, tn), lambda i, j: (i, j)),
        compiler_params=pltpu.CompilerParams(
            # Independent output blocks: shard both axes across TensorCores.
            dimension_semantics=("parallel", "parallel"),
            vmem_limit_bytes=vmem_limit,
        ),
    )(x, y, xn, ynT)

    if Mp != M or Np != N:
        out = out[:M, :N]
    return out


def _reference(z1, z2, temp, eps=1e-8):
    """Pure-JAX reference matching torch.nn.CosineSimilarity(dim=-1)/temp."""
    z1 = z1.astype(jnp.float32)
    z2 = z2.astype(jnp.float32)
    num = jnp.einsum("mh,nh->mn", z1, z2)
    denom = jnp.maximum(
        jnp.linalg.norm(z1, axis=-1)[:, None] * jnp.linalg.norm(z2, axis=-1)[None, :],
        eps)
    return num / denom / temp


if __name__ == "__main__":
    temp = 0.05
    key = jax.random.PRNGKey(0)
    k1, k2, k3, k4 = jax.random.split(key, 4)

    # 1) The exact MixCSE call pattern: sim(z1.unsqueeze(1), z2.unsqueeze(0)) -> (B, B).
    B, H = 8, 32
    z1 = jax.random.normal(k1, (B, H), dtype=jnp.float32)
    z2 = jax.random.normal(k2, (B, H), dtype=jnp.float32)
    out = jax.block_until_ready(similarity(z1[:, None, :], z2[None, :, :], temp))
    ref = _reference(z1, z2, temp)
    assert out.shape == (B, B) and out.dtype == z1.dtype
    np.testing.assert_allclose(np.asarray(out), np.asarray(ref), rtol=5e-3, atol=5e-3)

    # 2) A ragged multi-block case to exercise tiling + edge padding.
    M, N, H2 = 100, 200, 32
    a = jax.random.normal(k3, (M, H2), dtype=jnp.float32)
    b = jax.random.normal(k4, (N, H2), dtype=jnp.float32)
    out2 = jax.block_until_ready(similarity(a, b, temp, block_m=64, block_n=128))
    ref2 = _reference(a, b, temp)
    assert out2.shape == (M, N)
    np.testing.assert_allclose(np.asarray(out2), np.asarray(ref2), rtol=5e-3, atol=5e-3)

    print("KERNEL_OK")
</pallas_src>

<mosaic_0001>
module attributes {stable_mosaic.version = 11 : i64} {
  func.func @_sim_kernel(%arg0: i32, %arg1: i32, %arg2: memref<8x32xf32, #tpu.memory_space<vmem>>, %arg3: memref<8x32xf32, #tpu.memory_space<vmem>>, %arg4: memref<8x1xf32, #tpu.memory_space<vmem>>, %arg5: memref<1x8xf32, #tpu.memory_space<vmem>>, %arg6: memref<8x8xf32, #tpu.memory_space<vmem>>) attributes {dimension_semantics = [#tpu.dimension_semantics<parallel>, #tpu.dimension_semantics<parallel>], iteration_bounds = array<i64: 1, 1>, scalar_prefetch = 0 : i64, scratch_operands = 0 : i64, tpu.core_type = #tpu.core_type<tc>, window_params = [{transform_indices = @transform_0, window_bounds = array<i64: 8, 32>}, {transform_indices = @transform_1, window_bounds = array<i64: 8, 32>}, {transform_indices = @transform_2, window_bounds = array<i64: 8, 1>}, {transform_indices = @transform_3, window_bounds = array<i64: 1, 8>}, {transform_indices = @transform_4, window_bounds = array<i64: 8, 8>}]} {
    %c0 = arith.constant 0 : index
    %c0_0 = arith.constant 0 : index
    %0 = vector.load %arg2[%c0, %c0_0] : memref<8x32xf32, #tpu.memory_space<vmem>>, vector<8x32xf32>
    %c0_1 = arith.constant 0 : index
    %c0_2 = arith.constant 0 : index
    %1 = vector.load %arg3[%c0_1, %c0_2] : memref<8x32xf32, #tpu.memory_space<vmem>>, vector<8x32xf32>
    %cst = arith.constant dense<0.000000e+00> : vector<8x8xf32>
    %2 = tpu.matmul %0, %1, %cst {dimension_numbers = #tpu.dot_dimension_numbers<[1], [1], [0], [0], [0, 0, 1, 0], [], []>} : vector<8x32xf32>, vector<8x32xf32>, vector<8x8xf32> -> vector<8x8xf32>
    %c0_3 = arith.constant 0 : index
    %c0_4 = arith.constant 0 : index
    %3 = vector.load %arg4[%c0_3, %c0_4] : memref<8x1xf32, #tpu.memory_space<vmem>>, vector<8x1xf32>
    %c0_5 = arith.constant 0 : index
    %c0_6 = arith.constant 0 : index
    %4 = vector.load %arg5[%c0_5, %c0_6] : memref<1x8xf32, #tpu.memory_space<vmem>>, vector<1x8xf32>
    %5 = vector.broadcast %3 : vector<8x1xf32> to vector<8x8xf32>
    %6 = vector.broadcast %4 : vector<1x8xf32> to vector<8x8xf32>
    %7 = arith.mulf %5, %6 : vector<8x8xf32>
    %cst_7 = arith.constant 5.000000e-10 : f32
    %8 = vector.broadcast %cst_7 : f32 to vector<8x8xf32>
    %9 = arith.maximumf %7, %8 : vector<8x8xf32>
    %10 = tpu.reciprocal %9 {approx = true} : vector<8x8xf32> -> vector<8x8xf32>
    %11 = arith.mulf %2, %10 : vector<8x8xf32>
    %c0_8 = arith.constant 0 : index
    %c0_9 = arith.constant 0 : index
    %12 = vector.load %arg6[%c0_8, %c0_9] : memref<8x8xf32, #tpu.memory_space<vmem>>, vector<8x8xf32>
    tpu.vector_store %arg6[%c0_8, %c0_9], %11 {strides = array<i32>} : memref<8x8xf32, #tpu.memory_space<vmem>>, vector<8x8xf32>,
    return
  }
  func.func @transform_0(%arg0: i32, %arg1: i32) -> (i32, i32) {
    %c0_i32 = arith.constant 0 : i32
    %c0_i32_0 = arith.constant 0 : i32
    return %arg0, %c0_i32 : i32, i32
  }
  func.func @transform_1(%arg0: i32, %arg1: i32) -> (i32, i32) {
    %c0_i32 = arith.constant 0 : i32
    %c0_i32_0 = arith.constant 0 : i32
    return %arg1, %c0_i32 : i32, i32
  }
  func.func @transform_2(%arg0: i32, %arg1: i32) -> (i32, i32) {
    %c0_i32 = arith.constant 0 : i32
    %c0_i32_0 = arith.constant 0 : i32
    return %arg0, %c0_i32 : i32, i32
  }
  func.func @transform_3(%arg0: i32, %arg1: i32) -> (i32, i32) {
    %c0_i32 = arith.constant 0 : i32
    %c0_i32_0 = arith.constant 0 : i32
    return %c0_i32, %arg1 : i32, i32
  }
  func.func @transform_4(%arg0: i32, %arg1: i32) -> (i32, i32) {
    %c0_i32 = arith.constant 0 : i32
    return %arg0, %arg1 : i32, i32
  }
}

</mosaic_0001>

<bundles_post_ra>
// kernel: tpu_custom_call.1
= control target key start
LH: loop header
LB: loop body
LE: loop exit
PB: predicated region body
PF: predicated region fallthrough
CT: control target
= control target key end

     0   :  { %9 = vsyncpa [#allocation3], 0  ;;  %s272_s0 = inlined_call_operand.vmem [shape: f32[8,32], index: 0, kind: input, shape index: {}]   ;;  %s273_s1 = inlined_call_operand.hbm [shape: f32[8,32], index: 1, kind: input, shape index: {}]   ;;  %s274_s2 = inlined_call_operand.vmem [shape: f32[8,1], index: 2, kind: input, shape index: {}]   ;;  %s275_s3 = inlined_call_operand.vmem [shape: f32[1,8], index: 3, kind: input, shape index: {}]   ;;  %s276_s4 = inlined_call_operand.hbm [shape: f32[8,8], index: 4, kind: output, shape index: {}]  }
   0x1   :  { %10 = vsyncpa [#allocation4], 0  ;;  %s209_s15 = smov [#allocation2]   ;;  %s161_s19 = scalar_lea.hbm %s273_s1, 128 }
   0x2   :  { %s19_s16 = sshll.u32 %s209_s15, 4  ;;  %p162_p0 = scmp.ne.s32.totalorder %s273_s1, %s161_s19  ;;  %s20_s16 = int_to_ptr.vmem [resolvable:$true] %s19_s16 }
   0x3   :  { %p165_p1 = scmp.lt.u32.totalorder %s161_s19, %s273_s1 }
   0x5   :  { %p167_p2 = pnand %p165_p1, %p162_p0 }
   0x7   :  { %170 = shalt.err (!%p167_p2)
}
   0x8   :  { %s171_s24 = scalar_lea.vmem %s20_s16, 128  ;;  %p176_p4 = scmp.lt.s32.totalorder %s20_s16, %s20_s16 }
   0x9   :  { %p172_p3 = scmp.ne.s32.totalorder %s20_s16, %s171_s24  ;;  %p177_p5 = scmp.lt.s32.totalorder %s171_s24, %s171_s24 }
   0xb   :  { %p178_p6 = por %p177_p5, %p176_p4 }
   0xd   :  { %p179_p7 = pnand %p178_p6, %p172_p3 }
   0xf   :  { %182 = shalt.err (!%p179_p7)
}
  0x10   :  { %22 = dma.hbm_to_vmem [thread:$0]  %s273_s1, 128, %s20_s16, [#allocation3]  }
  0x11   :  { %205 = dma.done.wait [#allocation3], 128  }
  0x12   :  { %206 = vsyncadd [#allocation3], 4294967168  ;;  %v210_v0 = vmov 0.0   ;;  %vm211_vm0 = vmmov 0   ;;  %v212_v1 = vmov 0   ;;  %vm32_vm1 = vcmask 261120  }
  0x13   :  { %148 = vmatprep.subr.mxu0 %v210_v0  ;;  %150 = vmatprep.mubr.msk.f32.mxu0 %vm211_vm0, %v210_v0  ;;  %v31_v2 = vld [vmem:[#allocation2] sm:$0xff]  ;;  %s213_s6 = smov [#allocation5]   ;;  %vm126_vm2 = vcmask 64512  }
  0x14   :  { %158 = vset.pattern.permute.xlu0 %v212_v1  ;;  %v109_v3 = vld [vmem:[%s274_s2] sm:$0xff]  ;;  %149 = vmatpush3.xpose.msk.msra.mxu0 %vm32_vm1, %v31_v2  ;;  %s134_s7 = sshll.u32 %s213_s6, 4  ;;  %s135_s7 = int_to_ptr.vmem [resolvable:$true] %s134_s7 }
  0x15   :  { %v30_v4 = vld [vmem:[%s272_s0] sm:$0xff]  ;;  %113 = vperm.xlu0 %158, %v109_v3   ;;  %s183_s0 = scalar_lea.vmem %s135_s7, 128  ;;  %p188_p9 = scmp.lt.s32.totalorder %s135_s7, %s135_s7 }
  0x16   :  { %v145_v5 = vld [vmem:[%s275_s3] ss:$0 sm:$0xff]  ;;  %p184_p8 = scmp.ne.s32.totalorder %s135_s7, %s183_s0  ;;  %p189_p10 = scmp.lt.s32.totalorder %s183_s0, %s183_s0 }
  0x17   :  { %151 = vmatmul.mubr.msk.f32.vlgmr.msra.gmra.mrb[0].mxu0 %vm32_vm1, %v30_v4 }
  0x18   :  { %p190_p11 = por %p189_p10, %p188_p9 }
  0x1a   :  { %p191_p12 = pnand %p190_p11, %p184_p8 }
  0x94   :  { %v114_v6 = vpop.permute.xlu0 %113 }
  0x95   :  { %v122_v7 = vmul.f32 %v145_v5, %v114_v6 }
  0x97   :  { %v123_v8 = vmax.f32 %v122_v7, 5e-10 }
  0x99   :  { %159 = vrcp.f32 %v123_v8 }
  0xa3   :  { %v160_v9 = vpop.eup %159 }
  0xea   :  { %v105_v10 = vpop.f32.mrb[0].mxu0 }
  0xeb   :  { %v125_v11 = vmul.f32 %v160_v9, %v105_v10  ;;  %v152_v12 = vpop.f32.mrb[1].mxu0 }
  0xed   :  { %127 = vst.msk [vmem:[#allocation5] sm:$0xff] %vm126_vm2, %v125_v11 }
  0xee   :  { %194 = shalt.err (!%p191_p12)
}
  0xef   :  { %s195_s8 = scalar_lea.hbm %s276_s4, 128 }
  0xf0   :  { %p196_p13 = scmp.ne.s32.totalorder %s276_s4, %s195_s8  ;;  %p199_p0 = scmp.lt.u32.totalorder %s195_s8, %s276_s4 }
  0xf2   :  { %p201_p1 = pnand %p199_p0, %p196_p13 }
  0xf4   :  { %204 = shalt.err (!%p201_p1)
}
  0xf5   :  { %137 = dma.vmem_to_hbm [thread:$0]  %s135_s7, 128, %s276_s4, [#allocation4]  }
  0xf6   :  { %207 = dma.done.wait [#allocation4], 128  }
  0xf7   :  { %208 = vsyncadd [#allocation4], 4294967168 }
  0xf8   :  { %141 = vsyncpa [#allocation3], 1 }
  0xf9   :  { %142 = vsyncpa [#allocation4], 1 }

</bundles_post_ra>
